<compile_context>
chip_gen: v7x
topology: tpu7x:2x2x1
jax: 0.10.0
libtpu: 0.0.40
codegen_flags: <defaults>
</compile_context>

<pallas_src>
import functools

import jax
import jax.numpy as jnp
from jax.experimental import pallas as pl
from jax.experimental.pallas import tpu as pltpu

# ---- model hyperparameters (emb_size == hidden_size so layer weights stack) ----
VOCAB_SIZE = 32
EMB_SIZE = 32
PADDING_IDX = 0
OUTPUT_SIZE = 8
HIDDEN_SIZE = 32
NUM_LAYERS = 2
BIDIRECTIONAL = False  # num_directions = 1
BATCH = 2
SEQ = 8

assert EMB_SIZE == HIDDEN_SIZE, "layer weight stacking requires emb_size == hidden_size"


def rnn_kernel(x_ref, proj_ref, pk_ref, out_ref, *, L):
    """Fused embedding-gather + multi-layer tanh RNN + final Linear.

    x_ref    : [B, T] int32, SMEM   token ids (batch_first, like the PyTorch module)
    proj_ref : [V, H] f32,  VMEM    emb_table @ W_ih_l0 + (b_ih0 + b_hh0)  (pre-folded)
    pk_ref   : [4H+2, H] f32, VMEM  packed: W_ih_l1 | W_hh_l0 | W_hh_l1 | W_fc(pad) |
                                            b_l1 | b_fc(pad)   (all pre-transposed)
    out_ref  : [B, OUTPUT_SIZE] f32 logits
    """
    B, T = x_ref.shape
    V, H = proj_ref.shape

    # ---- unpack the single packed-weights slab (static slices, one DMA total) ----
    off = 0
    wih = []
    for _ in range(L - 1):
        wih.append(pk_ref[off:off + H, :]); off += H
    whh = []
    for _ in range(L):
        whh.append(pk_ref[off:off + H, :]); off += H
    wfc = pk_ref[off:off + H, :]; off += H
    bias = []
    for _ in range(L - 1):
        bias.append(pk_ref[off:off + 1, :]); off += 1
    bfc = pk_ref[off:off + 1, :]

    # ---- in-kernel embedding gather as one-hot MXU matmuls.  Layer-0's W_ih and
    # bias are folded into proj_ref, so x0[t] is layer-0's full input term.  These
    # do not depend on the hidden state, so they hide under the serial recurrence. ----
    proj = proj_ref[...]
    lane = jax.lax.broadcasted_iota(jnp.int32, (1, V), 1)
    x0 = []
    for t in range(T):  # static unroll (T is tiny)
        onehot = jnp.concatenate(
            [jnp.where(lane == x_ref[b, t], 1.0, 0.0) for b in range(B)], axis=0)
        x0.append(jnp.dot(onehot, proj, preferred_element_type=jnp.float32))  # [B, H]

    # ---- wavefront recurrence: layer l step t immediately after layer l-1 step t.
    # Hidden states live in vregs; critical path ~ T + L dependent MXU+tanh ops. ----
    h = [jnp.zeros((B, H), jnp.float32) for _ in range(L)]
    for t in range(T):  # static unroll: the recurrence is the critical path
        h[0] = jnp.tanh(
            x0[t] + jnp.dot(h[0], whh[0], preferred_element_type=jnp.float32))
        for l in range(1, L):
            h[l] = jnp.tanh(
                jnp.dot(h[l - 1], wih[l - 1], preferred_element_type=jnp.float32)
                + jnp.dot(h[l], whh[l], preferred_element_type=jnp.float32)
                + bias[l - 1])

    # fc(out[:, -1, :]) == fc(last-timestep hidden of the top layer) for a
    # unidirectional batch_first nn.RNN.  wfc is lane-padded to [H, H] in the
    # packed slab; slice to the true output width (single masked vst).
    logits = jnp.dot(h[L - 1], wfc, preferred_element_type=jnp.float32) + bfc
    out_ref[...] = logits[:, :out_ref.shape[1]]


def prepare_params(emb_table, wih, whh, bias, wfc, bfc):
    """One-time parameter prep (hoisted out of the per-call forward path)."""
    H = HIDDEN_SIZE
    # Fold layer-0's input projection AND bias into the embedding table: row v
    # becomes emb[v] @ W_ih0 + (b_ih0 + b_hh0).  (padding_idx row -> 0 + b0,
    # exactly what nn.Embedding(padding_idx) + nn.RNN computes.)
    proj_table = jnp.dot(emb_table, wih[0]) + bias[0]                    # [V, H]

    wfc_pad = jnp.zeros((H, H), jnp.float32).at[:, :OUTPUT_SIZE].set(wfc)
    bfc_pad = jnp.zeros((1, H), jnp.float32).at[:, :OUTPUT_SIZE].set(bfc)

    packed = jnp.concatenate(
        [wih[l] for l in range(1, NUM_LAYERS)]      # W_ih layers 1..L-1
        + [whh[l] for l in range(NUM_LAYERS)]       # W_hh layers 0..L-1
        + [wfc_pad]                                  # classifier weight (lane-padded)
        + [bias[l] for l in range(1, NUM_LAYERS)]   # biases layers 1..L-1
        + [bfc_pad],                                 # classifier bias (lane-padded)
        axis=0).astype(jnp.float32)                  # [(4H+2), H] for L=2
    return proj_table.astype(jnp.float32), packed


@jax.jit
def rnn_forward(x, proj_table, packed):
    B, T = x.shape
    V, H = proj_table.shape
    L = NUM_LAYERS

    cost = pl.CostEstimate(
        flops=(2 * T * B * V * H                    # one-hot gather matmuls
               + 2 * (2 * L - 1) * T * B * H * H    # recurrence matmuls
               + 2 * B * H * H),                    # final linear (lane-padded)
        transcendentals=L * T * B * H,              # tanh
        bytes_accessed=4 * (x.size + proj_table.size + packed.size + B * OUTPUT_SIZE),
    )

    return pl.pallas_call(
        functools.partial(rnn_kernel, L=L),
        out_shape=jax.ShapeDtypeStruct((B, OUTPUT_SIZE), jnp.float32),
        in_specs=[
            pl.BlockSpec(memory_space=pltpu.MemorySpace.SMEM),   # token ids -> SMEM scalars
            pl.BlockSpec(memory_space=pltpu.MemorySpace.VMEM),   # projected emb table
            pl.BlockSpec(memory_space=pltpu.MemorySpace.VMEM),   # packed weights slab
        ],
        out_specs=pl.BlockSpec(memory_space=pltpu.MemorySpace.VMEM),
        cost_estimate=cost,
    )(x, proj_table, packed)


def rnn_reference(x, emb_table, wih, whh, bias, wfc, bfc):
    """Pure-JAX reference with identical semantics (for a correctness check)."""
    B, T = x.shape
    layer_in = emb_table[x]                                   # [B, T, H]
    for l in range(NUM_LAYERS):
        h = jnp.zeros((B, HIDDEN_SIZE), jnp.float32)
        outs = []
        for t in range(T):
            h = jnp.tanh(layer_in[:, t, :] @ wih[l] + bias[l] + h @ whh[l])
            outs.append(h)
        layer_in = jnp.stack(outs, axis=1)
    return layer_in[:, -1, :] @ wfc + bfc


def init_params(key):
    k = jax.random.split(key, 8)
    scale = 1.0 / jnp.sqrt(HIDDEN_SIZE)

    emb_table = 0.1 * jax.random.normal(k[0], (VOCAB_SIZE, EMB_SIZE), jnp.float32)
    # padding_idx row is zeroed, as nn.Embedding(padding_idx=...) does.
    emb_table = emb_table.at[PADDING_IDX].set(0.0)

    # PyTorch nn.RNN stores weight_ih_l{k} as [H, in]; we keep the pre-transposed
    # [in, H] form so the kernel computes x @ W.  With EMB_SIZE == HIDDEN_SIZE all
    # layers stack into [L, H, H].
    wih = scale * jax.random.normal(k[1], (NUM_LAYERS, HIDDEN_SIZE, HIDDEN_SIZE), jnp.float32)
    whh = scale * jax.random.normal(k[2], (NUM_LAYERS, HIDDEN_SIZE, HIDDEN_SIZE), jnp.float32)
    b_ih = scale * jax.random.normal(k[3], (NUM_LAYERS, 1, HIDDEN_SIZE), jnp.float32)
    b_hh = scale * jax.random.normal(k[4], (NUM_LAYERS, 1, HIDDEN_SIZE), jnp.float32)
    bias = b_ih + b_hh                                        # added once per step

    wfc = scale * jax.random.normal(k[5], (HIDDEN_SIZE, OUTPUT_SIZE), jnp.float32)
    bfc = scale * jax.random.normal(k[6], (1, OUTPUT_SIZE), jnp.float32)
    return emb_table, wih, whh, bias, wfc, bfc


if __name__ == "__main__":
    key = jax.random.PRNGKey(0)
    pkey, xkey = jax.random.split(key)
    emb_table, wih, whh, bias, wfc, bfc = init_params(pkey)

    # One-time parameter preparation — NOT part of the per-call forward path.
    proj_table, packed = prepare_params(emb_table, wih, whh, bias, wfc, bfc)
    proj_table, packed = jax.block_until_ready((proj_table, packed))

    x = jax.random.randint(xkey, (BATCH, SEQ), 0, VOCAB_SIZE, dtype=jnp.int32)

    out = rnn_forward(x, proj_table, packed)
    out = jax.block_until_ready(out)
    assert out.shape == (BATCH, OUTPUT_SIZE)
    assert out.dtype == jnp.float32

    ref = rnn_reference(x, emb_table, wih, whh, bias, wfc, bfc)
    assert jnp.allclose(out, ref, rtol=5e-2, atol=5e-2), (out, ref)

    print("KERNEL_OK")
</pallas_src>

<mosaic_0001>
module attributes {stable_mosaic.version = 11 : i64} {
  func.func @rnn_kernel(%arg0: memref<2x8xi32, #tpu.memory_space<smem>>, %arg1: memref<32x32xf32, #tpu.memory_space<vmem>>, %arg2: memref<130x32xf32, #tpu.memory_space<vmem>>, %arg3: memref<2x8xf32, #tpu.memory_space<vmem>>) attributes {dimension_semantics = [], scalar_prefetch = 0 : i64, scratch_operands = 0 : i64, tpu.core_type = #tpu.core_type<tc>} {
    %c0 = arith.constant 0 : index
    %c0_0 = arith.constant 0 : index
    %0 = vector.load %arg2[%c0, %c0_0] : memref<130x32xf32, #tpu.memory_space<vmem>>, vector<32x32xf32>
    %c32 = arith.constant 32 : index
    %c0_1 = arith.constant 0 : index
    %1 = vector.load %arg2[%c32, %c0_1] : memref<130x32xf32, #tpu.memory_space<vmem>>, vector<32x32xf32>
    %c64 = arith.constant 64 : index
    %c0_2 = arith.constant 0 : index
    %2 = vector.load %arg2[%c64, %c0_2] : memref<130x32xf32, #tpu.memory_space<vmem>>, vector<32x32xf32>
    %c96 = arith.constant 96 : index
    %c0_3 = arith.constant 0 : index
    %3 = vector.load %arg2[%c96, %c0_3] : memref<130x32xf32, #tpu.memory_space<vmem>>, vector<32x32xf32>
    %c128 = arith.constant 128 : index
    %c0_4 = arith.constant 0 : index
    %4 = vector.load %arg2[%c128, %c0_4] : memref<130x32xf32, #tpu.memory_space<vmem>>, vector<1x32xf32>
    %c129 = arith.constant 129 : index
    %c0_5 = arith.constant 0 : index
    %5 = vector.load %arg2[%c129, %c0_5] : memref<130x32xf32, #tpu.memory_space<vmem>>, vector<1x32xf32>
    %c0_6 = arith.constant 0 : index
    %c0_7 = arith.constant 0 : index
    %6 = vector.load %arg1[%c0_6, %c0_7] : memref<32x32xf32, #tpu.memory_space<vmem>>, vector<32x32xf32>
    %7 = tpu.iota {dimensions = array<i32: 1>} : vector<1x32xi32>
    %c0_8 = arith.constant 0 : index
    %c0_9 = arith.constant 0 : index
    %8 = memref.load %arg0[%c0_8, %c0_9] : memref<2x8xi32, #tpu.memory_space<smem>>
    %9 = vector.broadcast %8 : i32 to vector<1x32xi32>
    %10 = arith.cmpi eq, %7, %9 : vector<1x32xi32>
    %cst = arith.constant 1.000000e+00 : f32
    %cst_10 = arith.constant 0.000000e+00 : f32
    %11 = vector.broadcast %cst : f32 to vector<1x32xf32>
    %12 = vector.broadcast %cst_10 : f32 to vector<1x32xf32>
    %13 = arith.select %10, %11, %12 : vector<1x32xi1>, vector<1x32xf32>
    %c1 = arith.constant 1 : index
    %c0_11 = arith.constant 0 : index
    %14 = memref.load %arg0[%c1, %c0_11] : memref<2x8xi32, #tpu.memory_space<smem>>
    %15 = vector.broadcast %14 : i32 to vector<1x32xi32>
    %16 = arith.cmpi eq, %7, %15 : vector<1x32xi32>
    %cst_12 = arith.constant 1.000000e+00 : f32
    %cst_13 = arith.constant 0.000000e+00 : f32
    %17 = vector.broadcast %cst_12 : f32 to vector<1x32xf32>
    %18 = vector.broadcast %cst_13 : f32 to vector<1x32xf32>
    %19 = arith.select %16, %17, %18 : vector<1x32xi1>, vector<1x32xf32>
    %20 = tpu.concatenate %13, %19 in 0 : vector<1x32xf32>, vector<1x32xf32> -> vector<2x32xf32>
    %cst_14 = arith.constant dense<0.000000e+00> : vector<2x32xf32>
    %21 = tpu.matmul %20, %6, %cst_14 {dimension_numbers = #tpu.dot_dimension_numbers<[1], [0], [0], [1], [0, 0, 1, 1], [], []>} : vector<2x32xf32>, vector<32x32xf32>, vector<2x32xf32> -> vector<2x32xf32>
    %c0_15 = arith.constant 0 : index
    %c1_16 = arith.constant 1 : index
    %22 = memref.load %arg0[%c0_15, %c1_16] : memref<2x8xi32, #tpu.memory_space<smem>>
    %23 = vector.broadcast %22 : i32 to vector<1x32xi32>
    %24 = arith.cmpi eq, %7, %23 : vector<1x32xi32>
    %cst_17 = arith.constant 1.000000e+00 : f32
    %cst_18 = arith.constant 0.000000e+00 : f32
    %25 = vector.broadcast %cst_17 : f32 to vector<1x32xf32>
    %26 = vector.broadcast %cst_18 : f32 to vector<1x32xf32>
    %27 = arith.select %24, %25, %26 : vector<1x32xi1>, vector<1x32xf32>
    %c1_19 = arith.constant 1 : index
    %c1_20 = arith.constant 1 : index
    %28 = memref.load %arg0[%c1_19, %c1_20] : memref<2x8xi32, #tpu.memory_space<smem>>
    %29 = vector.broadcast %28 : i32 to vector<1x32xi32>
    %30 = arith.cmpi eq, %7, %29 : vector<1x32xi32>
    %cst_21 = arith.constant 1.000000e+00 : f32
    %cst_22 = arith.constant 0.000000e+00 : f32
    %31 = vector.broadcast %cst_21 : f32 to vector<1x32xf32>
    %32 = vector.broadcast %cst_22 : f32 to vector<1x32xf32>
    %33 = arith.select %30, %31, %32 : vector<1x32xi1>, vector<1x32xf32>
    %34 = tpu.concatenate %27, %33 in 0 : vector<1x32xf32>, vector<1x32xf32> -> vector<2x32xf32>
    %cst_23 = arith.constant dense<0.000000e+00> : vector<2x32xf32>
    %35 = tpu.matmul %34, %6, %cst_23 {dimension_numbers = #tpu.dot_dimension_numbers<[1], [0], [0], [1], [0, 0, 1, 1], [], []>} : vector<2x32xf32>, vector<32x32xf32>, vector<2x32xf32> -> vector<2x32xf32>
    %c0_24 = arith.constant 0 : index
    %c2 = arith.constant 2 : index
    %36 = memref.load %arg0[%c0_24, %c2] : memref<2x8xi32, #tpu.memory_space<smem>>
    %37 = vector.broadcast %36 : i32 to vector<1x32xi32>
    %38 = arith.cmpi eq, %7, %37 : vector<1x32xi32>
    %cst_25 = arith.constant 1.000000e+00 : f32
    %cst_26 = arith.constant 0.000000e+00 : f32
    %39 = vector.broadcast %cst_25 : f32 to vector<1x32xf32>
    %40 = vector.broadcast %cst_26 : f32 to vector<1x32xf32>
    %41 = arith.select %38, %39, %40 : vector<1x32xi1>, vector<1x32xf32>
    %c1_27 = arith.constant 1 : index
    %c2_28 = arith.constant 2 : index
    %42 = memref.load %arg0[%c1_27, %c2_28] : memref<2x8xi32, #tpu.memory_space<smem>>
    %43 = vector.broadcast %42 : i32 to vector<1x32xi32>
    %44 = arith.cmpi eq, %7, %43 : vector<1x32xi32>
    %cst_29 = arith.constant 1.000000e+00 : f32
    %cst_30 = arith.constant 0.000000e+00 : f32
    %45 = vector.broadcast %cst_29 : f32 to vector<1x32xf32>
    %46 = vector.broadcast %cst_30 : f32 to vector<1x32xf32>
    %47 = arith.select %44, %45, %46 : vector<1x32xi1>, vector<1x32xf32>
    %48 = tpu.concatenate %41, %47 in 0 : vector<1x32xf32>, vector<1x32xf32> -> vector<2x32xf32>
    %cst_31 = arith.constant dense<0.000000e+00> : vector<2x32xf32>
    %49 = tpu.matmul %48, %6, %cst_31 {dimension_numbers = #tpu.dot_dimension_numbers<[1], [0], [0], [1], [0, 0, 1, 1], [], []>} : vector<2x32xf32>, vector<32x32xf32>, vector<2x32xf32> -> vector<2x32xf32>
    %c0_32 = arith.constant 0 : index
    %c3 = arith.constant 3 : index
    %50 = memref.load %arg0[%c0_32, %c3] : memref<2x8xi32, #tpu.memory_space<smem>>
    %51 = vector.broadcast %50 : i32 to vector<1x32xi32>
    %52 = arith.cmpi eq, %7, %51 : vector<1x32xi32>
    %cst_33 = arith.constant 1.000000e+00 : f32
    %cst_34 = arith.constant 0.000000e+00 : f32
    %53 = vector.broadcast %cst_33 : f32 to vector<1x32xf32>
    %54 = vector.broadcast %cst_34 : f32 to vector<1x32xf32>
    %55 = arith.select %52, %53, %54 : vector<1x32xi1>, vector<1x32xf32>
    %c1_35 = arith.constant 1 : index
    %c3_36 = arith.constant 3 : index
    %56 = memref.load %arg0[%c1_35, %c3_36] : memref<2x8xi32, #tpu.memory_space<smem>>
    %57 = vector.broadcast %56 : i32 to vector<1x32xi32>
    %58 = arith.cmpi eq, %7, %57 : vector<1x32xi32>
    %cst_37 = arith.constant 1.000000e+00 : f32
    %cst_38 = arith.constant 0.000000e+00 : f32
    %59 = vector.broadcast %cst_37 : f32 to vector<1x32xf32>
    %60 = vector.broadcast %cst_38 : f32 to vector<1x32xf32>
    %61 = arith.select %58, %59, %60 : vector<1x32xi1>, vector<1x32xf32>
    %62 = tpu.concatenate %55, %61 in 0 : vector<1x32xf32>, vector<1x32xf32> -> vector<2x32xf32>
    %cst_39 = arith.constant dense<0.000000e+00> : vector<2x32xf32>
    %63 = tpu.matmul %62, %6, %cst_39 {dimension_numbers = #tpu.dot_dimension_numbers<[1], [0], [0], [1], [0, 0, 1, 1], [], []>} : vector<2x32xf32>, vector<32x32xf32>, vector<2x32xf32> -> vector<2x32xf32>
    %c0_40 = arith.constant 0 : index
    %c4 = arith.constant 4 : index
    %64 = memref.load %arg0[%c0_40, %c4] : memref<2x8xi32, #tpu.memory_space<smem>>
    %65 = vector.broadcast %64 : i32 to vector<1x32xi32>
    %66 = arith.cmpi eq, %7, %65 : vector<1x32xi32>
    %cst_41 = arith.constant 1.000000e+00 : f32
    %cst_42 = arith.constant 0.000000e+00 : f32
    %67 = vector.broadcast %cst_41 : f32 to vector<1x32xf32>
    %68 = vector.broadcast %cst_42 : f32 to vector<1x32xf32>
    %69 = arith.select %66, %67, %68 : vector<1x32xi1>, vector<1x32xf32>
    %c1_43 = arith.constant 1 : index
    %c4_44 = arith.constant 4 : index
    %70 = memref.load %arg0[%c1_43, %c4_44] : memref<2x8xi32, #tpu.memory_space<smem>>
    %71 = vector.broadcast %70 : i32 to vector<1x32xi32>
    %72 = arith.cmpi eq, %7, %71 : vector<1x32xi32>
    %cst_45 = arith.constant 1.000000e+00 : f32
    %cst_46 = arith.constant 0.000000e+00 : f32
    %73 = vector.broadcast %cst_45 : f32 to vector<1x32xf32>
    %74 = vector.broadcast %cst_46 : f32 to vector<1x32xf32>
    %75 = arith.select %72, %73, %74 : vector<1x32xi1>, vector<1x32xf32>
    %76 = tpu.concatenate %69, %75 in 0 : vector<1x32xf32>, vector<1x32xf32> -> vector<2x32xf32>
    %cst_47 = arith.constant dense<0.000000e+00> : vector<2x32xf32>
    %77 = tpu.matmul %76, %6, %cst_47 {dimension_numbers = #tpu.dot_dimension_numbers<[1], [0], [0], [1], [0, 0, 1, 1], [], []>} : vector<2x32xf32>, vector<32x32xf32>, vector<2x32xf32> -> vector<2x32xf32>
    %c0_48 = arith.constant 0 : index
    %c5 = arith.constant 5 : index
    %78 = memref.load %arg0[%c0_48, %c5] : memref<2x8xi32, #tpu.memory_space<smem>>
    %79 = vector.broadcast %78 : i32 to vector<1x32xi32>
    %80 = arith.cmpi eq, %7, %79 : vector<1x32xi32>
    %cst_49 = arith.constant 1.000000e+00 : f32
    %cst_50 = arith.constant 0.000000e+00 : f32
    %81 = vector.broadcast %cst_49 : f32 to vector<1x32xf32>
    %82 = vector.broadcast %cst_50 : f32 to vector<1x32xf32>
    %83 = arith.select %80, %81, %82 : vector<1x32xi1>, vector<1x32xf32>
    %c1_51 = arith.constant 1 : index
    %c5_52 = arith.constant 5 : index
    %84 = memref.load %arg0[%c1_51, %c5_52] : memref<2x8xi32, #tpu.memory_space<smem>>
    %85 = vector.broadcast %84 : i32 to vector<1x32xi32>
    %86 = arith.cmpi eq, %7, %85 : vector<1x32xi32>
    %cst_53 = arith.constant 1.000000e+00 : f32
    %cst_54 = arith.constant 0.000000e+00 : f32
    %87 = vector.broadcast %cst_53 : f32 to vector<1x32xf32>
    %88 = vector.broadcast %cst_54 : f32 to vector<1x32xf32>
    %89 = arith.select %86, %87, %88 : vector<1x32xi1>, vector<1x32xf32>
    %90 = tpu.concatenate %83, %89 in 0 : vector<1x32xf32>, vector<1x32xf32> -> vector<2x32xf32>
    %cst_55 = arith.constant dense<0.000000e+00> : vector<2x32xf32>
    %91 = tpu.matmul %90, %6, %cst_55 {dimension_numbers = #tpu.dot_dimension_numbers<[1], [0], [0], [1], [0, 0, 1, 1], [], []>} : vector<2x32xf32>, vector<32x32xf32>, vector<2x32xf32> -> vector<2x32xf32>
    %c0_56 = arith.constant 0 : index
    %c6 = arith.constant 6 : index
    %92 = memref.load %arg0[%c0_56, %c6] : memref<2x8xi32, #tpu.memory_space<smem>>
    %93 = vector.broadcast %92 : i32 to vector<1x32xi32>
    %94 = arith.cmpi eq, %7, %93 : vector<1x32xi32>
    %cst_57 = arith.constant 1.000000e+00 : f32
    %cst_58 = arith.constant 0.000000e+00 : f32
    %95 = vector.broadcast %cst_57 : f32 to vector<1x32xf32>
    %96 = vector.broadcast %cst_58 : f32 to vector<1x32xf32>
    %97 = arith.select %94, %95, %96 : vector<1x32xi1>, vector<1x32xf32>
    %c1_59 = arith.constant 1 : index
    %c6_60 = arith.constant 6 : index
    %98 = memref.load %arg0[%c1_59, %c6_60] : memref<2x8xi32, #tpu.memory_space<smem>>
    %99 = vector.broadcast %98 : i32 to vector<1x32xi32>
    %100 = arith.cmpi eq, %7, %99 : vector<1x32xi32>
    %cst_61 = arith.constant 1.000000e+00 : f32
    %cst_62 = arith.constant 0.000000e+00 : f32
    %101 = vector.broadcast %cst_61 : f32 to vector<1x32xf32>
    %102 = vector.broadcast %cst_62 : f32 to vector<1x32xf32>
    %103 = arith.select %100, %101, %102 : vector<1x32xi1>, vector<1x32xf32>
    %104 = tpu.concatenate %97, %103 in 0 : vector<1x32xf32>, vector<1x32xf32> -> vector<2x32xf32>
    %cst_63 = arith.constant dense<0.000000e+00> : vector<2x32xf32>
    %105 = tpu.matmul %104, %6, %cst_63 {dimension_numbers = #tpu.dot_dimension_numbers<[1], [0], [0], [1], [0, 0, 1, 1], [], []>} : vector<2x32xf32>, vector<32x32xf32>, vector<2x32xf32> -> vector<2x32xf32>
    %c0_64 = arith.constant 0 : index
    %c7 = arith.constant 7 : index
    %106 = memref.load %arg0[%c0_64, %c7] : memref<2x8xi32, #tpu.memory_space<smem>>
    %107 = vector.broadcast %106 : i32 to vector<1x32xi32>
    %108 = arith.cmpi eq, %7, %107 : vector<1x32xi32>
    %cst_65 = arith.constant 1.000000e+00 : f32
    %cst_66 = arith.constant 0.000000e+00 : f32
    %109 = vector.broadcast %cst_65 : f32 to vector<1x32xf32>
    %110 = vector.broadcast %cst_66 : f32 to vector<1x32xf32>
    %111 = arith.select %108, %109, %110 : vector<1x32xi1>, vector<1x32xf32>
    %c1_67 = arith.constant 1 : index
    %c7_68 = arith.constant 7 : index
    %112 = memref.load %arg0[%c1_67, %c7_68] : memref<2x8xi32, #tpu.memory_space<smem>>
    %113 = vector.broadcast %112 : i32 to vector<1x32xi32>
    %114 = arith.cmpi eq, %7, %113 : vector<1x32xi32>
    %cst_69 = arith.constant 1.000000e+00 : f32
    %cst_70 = arith.constant 0.000000e+00 : f32
    %115 = vector.broadcast %cst_69 : f32 to vector<1x32xf32>
    %116 = vector.broadcast %cst_70 : f32 to vector<1x32xf32>
    %117 = arith.select %114, %115, %116 : vector<1x32xi1>, vector<1x32xf32>
    %118 = tpu.concatenate %111, %117 in 0 : vector<1x32xf32>, vector<1x32xf32> -> vector<2x32xf32>
    %cst_71 = arith.constant dense<0.000000e+00> : vector<2x32xf32>
    %119 = tpu.matmul %118, %6, %cst_71 {dimension_numbers = #tpu.dot_dimension_numbers<[1], [0], [0], [1], [0, 0, 1, 1], [], []>} : vector<2x32xf32>, vector<32x32xf32>, vector<2x32xf32> -> vector<2x32xf32>
    %cst_72 = arith.constant 0.000000e+00 : f32
    %120 = vector.broadcast %cst_72 : f32 to vector<2x32xf32>
    %cst_73 = arith.constant 0.000000e+00 : f32
    %121 = vector.broadcast %cst_73 : f32 to vector<2x32xf32>
    %cst_74 = arith.constant dense<0.000000e+00> : vector<2x32xf32>
    %122 = tpu.matmul %120, %1, %cst_74 {dimension_numbers = #tpu.dot_dimension_numbers<[1], [0], [0], [1], [0, 0, 1, 1], [], []>} : vector<2x32xf32>, vector<32x32xf32>, vector<2x32xf32> -> vector<2x32xf32>
    %123 = arith.addf %21, %122 : vector<2x32xf32>
    %124 = math.tanh %123 : vector<2x32xf32>
    %cst_75 = arith.constant dense<0.000000e+00> : vector<2x32xf32>
    %125 = tpu.matmul %124, %0, %cst_75 {dimension_numbers = #tpu.dot_dimension_numbers<[1], [0], [0], [1], [0, 0, 1, 1], [], []>} : vector<2x32xf32>, vector<32x32xf32>, vector<2x32xf32> -> vector<2x32xf32>
    %cst_76 = arith.constant dense<0.000000e+00> : vector<2x32xf32>
    %126 = tpu.matmul %121, %2, %cst_76 {dimension_numbers = #tpu.dot_dimension_numbers<[1], [0], [0], [1], [0, 0, 1, 1], [], []>} : vector<2x32xf32>, vector<32x32xf32>, vector<2x32xf32> -> vector<2x32xf32>
    %127 = arith.addf %125, %126 : vector<2x32xf32>
    %128 = vector.broadcast %4 : vector<1x32xf32> to vector<2x32xf32>
    %129 = arith.addf %127, %128 : vector<2x32xf32>
    %130 = math.tanh %129 : vector<2x32xf32>
    %cst_77 = arith.constant dense<0.000000e+00> : vector<2x32xf32>
    %131 = tpu.matmul %124, %1, %cst_77 {dimension_numbers = #tpu.dot_dimension_numbers<[1], [0], [0], [1], [0, 0, 1, 1], [], []>} : vector<2x32xf32>, vector<32x32xf32>, vector<2x32xf32> -> vector<2x32xf32>
    %132 = arith.addf %35, %131 : vector<2x32xf32>
    %133 = math.tanh %132 : vector<2x32xf32>
    %cst_78 = arith.constant dense<0.000000e+00> : vector<2x32xf32>
    %134 = tpu.matmul %133, %0, %cst_78 {dimension_numbers = #tpu.dot_dimension_numbers<[1], [0], [0], [1], [0, 0, 1, 1], [], []>} : vector<2x32xf32>, vector<32x32xf32>, vector<2x32xf32> -> vector<2x32xf32>
    %cst_79 = arith.constant dense<0.000000e+00> : vector<2x32xf32>
    %135 = tpu.matmul %130, %2, %cst_79 {dimension_numbers = #tpu.dot_dimension_numbers<[1], [0], [0], [1], [0, 0, 1, 1], [], []>} : vector<2x32xf32>, vector<32x32xf32>, vector<2x32xf32> -> vector<2x32xf32>
    %136 = arith.addf %134, %135 : vector<2x32xf32>
    %137 = vector.broadcast %4 : vector<1x32xf32> to vector<2x32xf32>
    %138 = arith.addf %136, %137 : vector<2x32xf32>
    %139 = math.tanh %138 : vector<2x32xf32>
    %cst_80 = arith.constant dense<0.000000e+00> : vector<2x32xf32>
    %140 = tpu.matmul %133, %1, %cst_80 {dimension_numbers = #tpu.dot_dimension_numbers<[1], [0], [0], [1], [0, 0, 1, 1], [], []>} : vector<2x32xf32>, vector<32x32xf32>, vector<2x32xf32> -> vector<2x32xf32>
    %141 = arith.addf %49, %140 : vector<2x32xf32>
    %142 = math.tanh %141 : vector<2x32xf32>
    %cst_81 = arith.constant dense<0.000000e+00> : vector<2x32xf32>
    %143 = tpu.matmul %142, %0, %cst_81 {dimension_numbers = #tpu.dot_dimension_numbers<[1], [0], [0], [1], [0, 0, 1, 1], [], []>} : vector<2x32xf32>, vector<32x32xf32>, vector<2x32xf32> -> vector<2x32xf32>
    %cst_82 = arith.constant dense<0.000000e+00> : vector<2x32xf32>
    %144 = tpu.matmul %139, %2, %cst_82 {dimension_numbers = #tpu.dot_dimension_numbers<[1], [0], [0], [1], [0, 0, 1, 1], [], []>} : vector<2x32xf32>, vector<32x32xf32>, vector<2x32xf32> -> vector<2x32xf32>
    %145 = arith.addf %143, %144 : vector<2x32xf32>
    %146 = vector.broadcast %4 : vector<1x32xf32> to vector<2x32xf32>
    %147 = arith.addf %145, %146 : vector<2x32xf32>
    %148 = math.tanh %147 : vector<2x32xf32>
    %cst_83 = arith.constant dense<0.000000e+00> : vector<2x32xf32>
    %149 = tpu.matmul %142, %1, %cst_83 {dimension_numbers = #tpu.dot_dimension_numbers<[1], [0], [0], [1], [0, 0, 1, 1], [], []>} : vector<2x32xf32>, vector<32x32xf32>, vector<2x32xf32> -> vector<2x32xf32>
    %150 = arith.addf %63, %149 : vector<2x32xf32>
    %151 = math.tanh %150 : vector<2x32xf32>
    %cst_84 = arith.constant dense<0.000000e+00> : vector<2x32xf32>
    %152 = tpu.matmul %151, %0, %cst_84 {dimension_numbers = #tpu.dot_dimension_numbers<[1], [0], [0], [1], [0, 0, 1, 1], [], []>} : vector<2x32xf32>, vector<32x32xf32>, vector<2x32xf32> -> vector<2x32xf32>
    %cst_85 = arith.constant dense<0.000000e+00> : vector<2x32xf32>
    %153 = tpu.matmul %148, %2, %cst_85 {dimension_numbers = #tpu.dot_dimension_numbers<[1], [0], [0], [1], [0, 0, 1, 1], [], []>} : vector<2x32xf32>, vector<32x32xf32>, vector<2x32xf32> -> vector<2x32xf32>
    %154 = arith.addf %152, %153 : vector<2x32xf32>
    %155 = vector.broadcast %4 : vector<1x32xf32> to vector<2x32xf32>
    %156 = arith.addf %154, %155 : vector<2x32xf32>
    %157 = math.tanh %156 : vector<2x32xf32>
    %cst_86 = arith.constant dense<0.000000e+00> : vector<2x32xf32>
    %158 = tpu.matmul %151, %1, %cst_86 {dimension_numbers = #tpu.dot_dimension_numbers<[1], [0], [0], [1], [0, 0, 1, 1], [], []>} : vector<2x32xf32>, vector<32x32xf32>, vector<2x32xf32> -> vector<2x32xf32>
    %159 = arith.addf %77, %158 : vector<2x32xf32>
    %160 = math.tanh %159 : vector<2x32xf32>
    %cst_87 = arith.constant dense<0.000000e+00> : vector<2x32xf32>
    %161 = tpu.matmul %160, %0, %cst_87 {dimension_numbers = #tpu.dot_dimension_numbers<[1], [0], [0], [1], [0, 0, 1, 1], [], []>} : vector<2x32xf32>, vector<32x32xf32>, vector<2x32xf32> -> vector<2x32xf32>
    %cst_88 = arith.constant dense<0.000000e+00> : vector<2x32xf32>
    %162 = tpu.matmul %157, %2, %cst_88 {dimension_numbers = #tpu.dot_dimension_numbers<[1], [0], [0], [1], [0, 0, 1, 1], [], []>} : vector<2x32xf32>, vector<32x32xf32>, vector<2x32xf32> -> vector<2x32xf32>
    %163 = arith.addf %161, %162 : vector<2x32xf32>
    %164 = vector.broadcast %4 : vector<1x32xf32> to vector<2x32xf32>
    %165 = arith.addf %163, %164 : vector<2x32xf32>
    %166 = math.tanh %165 : vector<2x32xf32>
    %cst_89 = arith.constant dense<0.000000e+00> : vector<2x32xf32>
    %167 = tpu.matmul %160, %1, %cst_89 {dimension_numbers = #tpu.dot_dimension_numbers<[1], [0], [0], [1], [0, 0, 1, 1], [], []>} : vector<2x32xf32>, vector<32x32xf32>, vector<2x32xf32> -> vector<2x32xf32>
    %168 = arith.addf %91, %167 : vector<2x32xf32>
    %169 = math.tanh %168 : vector<2x32xf32>
    %cst_90 = arith.constant dense<0.000000e+00> : vector<2x32xf32>
    %170 = tpu.matmul %169, %0, %cst_90 {dimension_numbers = #tpu.dot_dimension_numbers<[1], [0], [0], [1], [0, 0, 1, 1], [], []>} : vector<2x32xf32>, vector<32x32xf32>, vector<2x32xf32> -> vector<2x32xf32>
    %cst_91 = arith.constant dense<0.000000e+00> : vector<2x32xf32>
    %171 = tpu.matmul %166, %2, %cst_91 {dimension_numbers = #tpu.dot_dimension_numbers<[1], [0], [0], [1], [0, 0, 1, 1], [], []>} : vector<2x32xf32>, vector<32x32xf32>, vector<2x32xf32> -> vector<2x32xf32>
    %172 = arith.addf %170, %171 : vector<2x32xf32>
    %173 = vector.broadcast %4 : vector<1x32xf32> to vector<2x32xf32>
    %174 = arith.addf %172, %173 : vector<2x32xf32>
    %175 = math.tanh %174 : vector<2x32xf32>
    %cst_92 = arith.constant dense<0.000000e+00> : vector<2x32xf32>
    %176 = tpu.matmul %169, %1, %cst_92 {dimension_numbers = #tpu.dot_dimension_numbers<[1], [0], [0], [1], [0, 0, 1, 1], [], []>} : vector<2x32xf32>, vector<32x32xf32>, vector<2x32xf32> -> vector<2x32xf32>
    %177 = arith.addf %105, %176 : vector<2x32xf32>
    %178 = math.tanh %177 : vector<2x32xf32>
    %cst_93 = arith.constant dense<0.000000e+00> : vector<2x32xf32>
    %179 = tpu.matmul %178, %0, %cst_93 {dimension_numbers = #tpu.dot_dimension_numbers<[1], [0], [0], [1], [0, 0, 1, 1], [], []>} : vector<2x32xf32>, vector<32x32xf32>, vector<2x32xf32> -> vector<2x32xf32>
    %cst_94 = arith.constant dense<0.000000e+00> : vector<2x32xf32>
    %180 = tpu.matmul %175, %2, %cst_94 {dimension_numbers = #tpu.dot_dimension_numbers<[1], [0], [0], [1], [0, 0, 1, 1], [], []>} : vector<2x32xf32>, vector<32x32xf32>, vector<2x32xf32> -> vector<2x32xf32>
    %181 = arith.addf %179, %180 : vector<2x32xf32>
    %182 = vector.broadcast %4 : vector<1x32xf32> to vector<2x32xf32>
    %183 = arith.addf %181, %182 : vector<2x32xf32>
    %184 = math.tanh %183 : vector<2x32xf32>
    %cst_95 = arith.constant dense<0.000000e+00> : vector<2x32xf32>
    %185 = tpu.matmul %178, %1, %cst_95 {dimension_numbers = #tpu.dot_dimension_numbers<[1], [0], [0], [1], [0, 0, 1, 1], [], []>} : vector<2x32xf32>, vector<32x32xf32>, vector<2x32xf32> -> vector<2x32xf32>
    %186 = arith.addf %119, %185 : vector<2x32xf32>
    %187 = math.tanh %186 : vector<2x32xf32>
    %cst_96 = arith.constant dense<0.000000e+00> : vector<2x32xf32>
    %188 = tpu.matmul %187, %0, %cst_96 {dimension_numbers = #tpu.dot_dimension_numbers<[1], [0], [0], [1], [0, 0, 1, 1], [], []>} : vector<2x32xf32>, vector<32x32xf32>, vector<2x32xf32> -> vector<2x32xf32>
    %cst_97 = arith.constant dense<0.000000e+00> : vector<2x32xf32>
    %189 = tpu.matmul %184, %2, %cst_97 {dimension_numbers = #tpu.dot_dimension_numbers<[1], [0], [0], [1], [0, 0, 1, 1], [], []>} : vector<2x32xf32>, vector<32x32xf32>, vector<2x32xf32> -> vector<2x32xf32>
    %190 = arith.addf %188, %189 : vector<2x32xf32>
    %191 = vector.broadcast %4 : vector<1x32xf32> to vector<2x32xf32>
    %192 = arith.addf %190, %191 : vector<2x32xf32>
    %193 = math.tanh %192 : vector<2x32xf32>
    %cst_98 = arith.constant dense<0.000000e+00> : vector<2x32xf32>
    %194 = tpu.matmul %193, %3, %cst_98 {dimension_numbers = #tpu.dot_dimension_numbers<[1], [0], [0], [1], [0, 0, 1, 1], [], []>} : vector<2x32xf32>, vector<32x32xf32>, vector<2x32xf32> -> vector<2x32xf32>
    %195 = vector.broadcast %5 : vector<1x32xf32> to vector<2x32xf32>
    %196 = arith.addf %194, %195 : vector<2x32xf32>
    %197 = vector.extract_strided_slice %196 {offsets = [0, 0], sizes = [2, 8], strides = [1, 1]} : vector<2x32xf32> to vector<2x8xf32>
    %c0_99 = arith.constant 0 : index
    %c0_100 = arith.constant 0 : index
    %198 = vector.load %arg3[%c0_99, %c0_100] : memref<2x8xf32, #tpu.memory_space<vmem>>, vector<2x8xf32>
    tpu.vector_store %arg3[%c0_99, %c0_100], %197 {strides = array<i32>} : memref<2x8xf32, #tpu.memory_space<vmem>>, vector<2x8xf32>,
    return
  }
}

</mosaic_0001>

<bundles_post_ra>
// kernel: rnn_forward.1
= control target key start
LH: loop header
LB: loop body
LE: loop exit
PB: predicated region body
PF: predicated region fallthrough
CT: control target
= control target key end

     0   :  { %8 = vsyncpa [#allocation4], 0  ;;  %s3828_s0 = inlined_call_operand.vmem [shape: s32[2,8], index: 0, kind: input, shape index: {}]   ;;  %s3829_s1 = inlined_call_operand.vmem [shape: f32[32,32], index: 1, kind: input, shape index: {}]   ;;  %s3830_s2 = inlined_call_operand.vmem [shape: f32[130,32], index: 2, kind: input, shape index: {}]   ;;  %s3831_s3 = inlined_call_operand.hbm [shape: f32[2,8], index: 3, kind: output, shape index: {}]  }
   0x1   :  { %9 = vsyncpa [#allocation3], 0  ;;  %s16_s14 = sshll.u32 %s3828_s0, 4  ;;  %s17_s14 = int_to_ptr.vmem [resolvable:$true] %s16_s14 }
   0x2   :  { %s3387_s15 = scalar_lea.vmem %s17_s14, 32  ;;  %p3392_p1 = scmp.lt.s32.totalorder %s17_s14, %s17_s14 }
   0x3   :  { %p3388_p0 = scmp.ne.s32.totalorder %s17_s14, %s3387_s15  ;;  %p3393_p2 = scmp.lt.s32.totalorder %s3387_s15, %s3387_s15 }
   0x5   :  { %p3394_p3 = por %p3393_p2, %p3392_p1 }
   0x7   :  { %p3395_p4 = pnand %p3394_p3, %p3388_p0 }
   0x9   :  { %3398 = shalt.err (!%p3395_p4)
}
   0xa   :  { %s3425_s16 = smov [#allocation2]  }
   0xb   :  { %19 = dma.vmem_to_smem %s17_s14, 32, %s3425_s16, [#allocation4]  }
   0xc   :  { %3421 = dma.done.wait [#allocation4], 32  }
   0xd   :  { %3422 = vsyncadd [#allocation4], 4294967264 }
   0xe   :  { %27 = sfence }
   0xf   :  { %v32_v0 = vld [vmem:[%s3830_s2 + $0x20] sm:$0xff]  ;;  %v33_v1 = vld [vmem:[%s3830_s2 + $0x28] sm:$0xff]  ;;  %v34_v2 = vld [vmem:[%s3830_s2 + $0x30] sm:$0xff]  ;;  %v3426_v3 = vmov 0.0|0.0   ;;  %vm3427_vm0 = vmmov 0   ;;  %v3428_v6 = vmov 0.0   ;;  %v50_v7 = vlaneseq }
  0x10   :  { %3136 = vmatprep.subr.bf16.mxu0 %v3426_v3  ;;  %v3463_v4 = vpack.c.bf16 %v33_v1, %v32_v0  ;;  %v35_v5 = vld [vmem:[%s3830_s2 + $0x38] sm:$0xff]  ;;  %2781 = vmatprep.mubr.msk.f32.mxu0 %vm3427_vm0, %v3428_v6  ;;  %s52_s24 = sld [smem:[#allocation2]]  ;;  %v36_v9 = vld [vmem:[%s3830_s2 + $0x40] sm:$0xff]  ;;  %v37_v10 = vld [vmem:[%s3830_s2 + $0x48] sm:$0xff]  ;;  %vm60_vm3 = vcmask 1040384   ;;  %vm125_vm4 = vcmask 261120  }
  0x11   :  { %s2560_s25 = sld [smem:[#allocation2 + $0x80]]  ;;  %3148 = vmatprep.subr.bf16.mxu1 %v3426_v3  ;;  %2803 = vmatprep.mubr.msk.f32.mxu1 %vm3427_vm0, %v3428_v6  ;;  %v3474_v8 = vpack.c.bf16 %v35_v5, %v34_v2  ;;  %v46_v11 = vld [vmem:[%s3829_s1] sm:$0xff]  ;;  %v47_v12 = vld [vmem:[%s3829_s1 + $0x8] sm:$0xff]  ;;  %v3489_v13 = vpack.c.bf16 %v37_v10, %v36_v9  ;;  %v3491_v14 = vand.u32 127, %v50_v7  ;;  %v48_v17 = vld [vmem:[%s3829_s1 + $0x10] sm:$0xff]  ;;  %s2561_s21 = sld [smem:[#allocation2 + $0x1]] }
  0x12   :  { %3138 = vmatpush3.bf16.msra.mxu0 %v3463_v4  ;;  %v3495_v15 = vpack.c.bf16 %v47_v12, %v46_v11  ;;  %v49_v18 = vld [vmem:[%s3829_s1 + $0x18] sm:$0xff]  ;;  %v38_v24 = vld [vmem:[%s3830_s2 + $0x50] sm:$0xff]  ;;  %v28_v27 = vld [vmem:[%s3830_s2] sm:$0xff]  ;;  %s2562_s22 = sld [smem:[#allocation2 + $0x81]]  ;;  %s2564_s26 = sld [smem:[#allocation2 + $0x82]] }
  0x13   :  { %3139 = vmatprep.subr.bf16.mxu0 %v3426_v3  ;;  %3150 = vmatpush3.bf16.msra.mxu1 %v3489_v13  ;;  %v3509_v20 = vpack.c.bf16 %v49_v18, %v48_v17  ;;  %v39_v25 = vld [vmem:[%s3830_s2 + $0x58] sm:$0xff]  ;;  %v29_v28 = vld [vmem:[%s3830_s2 + $0x8] sm:$0xff]  ;;  %v30_v30 = vld [vmem:[%s3830_s2 + $0x10] sm:$0xff]  ;;  %s2565_s27 = sld [smem:[#allocation2 + $0x3]]  ;;  %s2567_s29 = sld [smem:[#allocation2 + $0x4]] }
  0x14   :  { %3151 = vmatprep.subr.bf16.mxu1 %v3426_v3  ;;  %v3532_v26 = vpack.c.bf16 %v39_v25, %v38_v24  ;;  %v3542_v29 = vpack.c.bf16 %v29_v28, %v28_v27  ;;  %v31_v31 = vld [vmem:[%s3830_s2 + $0x18] sm:$0xff]  ;;  %v3588_v43 = vld [vmem:[%s3830_s2 + $0x80] ss:$0 sm:$0xff]  ;;  %s2566_s28 = sld [smem:[#allocation2 + $0x83]]  ;;  %s2568_s30 = sld [smem:[#allocation2 + $0x84]] }
  0x15   :  { %v3552_v32 = vpack.c.bf16 %v31_v31, %v30_v30  ;;  %s2569_s4 = sld [smem:[#allocation2 + $0x5]]  ;;  %s2571_s6 = sld [smem:[#allocation2 + $0x6]] }
  0x16   :  { %3141 = vmatpush3.bf16.msra.mxu0 %v3474_v8  ;;  %v53_v16 = vstv %s52_s24  ;;  %s2570_s5 = sld [smem:[#allocation2 + $0x85]]  ;;  %s2572_s7 = sld [smem:[#allocation2 + $0x86]] }
  0x17   :  { %3142 = vmatprep.subr.bf16.mxu0 %v3426_v3  ;;  %v57_v19 = vstv %s2560_s25  ;;  %vm54_vm1 = vcmp.eq.s32.totalorder %v3491_v14, %v53_v16  ;;  %3153 = vmatpush3.bf16.msra.mxu1 %v3532_v26  ;;  %v63_v35 = vstv %s2561_s21  ;;  %s2563_s25 = sld [smem:[#allocation2 + $0x2]]  ;;  %s2573_s8 = sld [smem:[#allocation2 + $0x7]] }
  0x18   :  { %vm58_vm2 = vcmp.eq.s32.totalorder %v3491_v14, %v57_v19  ;;  %v55_v21 = vsel %vm54_vm1, 1.0, %v3428_v6  ;;  %3154 = vmatprep.subr.bf16.mxu1 %v3426_v3  ;;  %v67_v36 = vstv %s2562_s22  ;;  %vm64_vm5 = vcmp.eq.s32.totalorder %v3491_v14, %v63_v35  ;;  %s2574_s9 = sld [smem:[#allocation2 + $0x87]]  ;;  %s3429_s19 = smov [#allocation5]  }
  0x19   :  { %2782 = vmatmul.mubr.f32.vlgmr.msra.gmra.mrb[0].mxu0 %v3428_v6  ;;  %v59_v22 = vsel %vm58_vm2, 1.0, %v3428_v6  ;;  %vm68_vm6 = vcmp.eq.s32.totalorder %v3491_v14, %v67_v36  ;;  %v65_v38 = vsel %vm64_vm5, 1.0, %v3428_v6  ;;  %v76_v52 = vstv %s2564_s26  ;;  %s2551_s20 = sshll.u32 %s3429_s19, 4  ;;  %s2552_s20 = int_to_ptr.vmem [resolvable:$true] %s2551_s20 }
  0x1a   :  { %3144 = vmatpush3.bf16.msra.mxu0 %v3495_v15  ;;  %2792 = vmatprep.mubr.msk.f32.mxu0 %vm3427_vm0, %v3428_v6  ;;  %v61_v23 = vsel %vm60_vm3, %v55_v21, %v59_v22  ;;  %v69_v39 = vsel %vm68_vm6, 1.0, %v3428_v6  ;;  %vm77_vm8 = vcmp.eq.s32.totalorder %v3491_v14, %v76_v52  ;;  %v81_v1 = vstv %s2565_s27  ;;  %s3399_s0 = scalar_lea.vmem %s2552_s20, 32  ;;  %p3404_p6 = scmp.lt.s32.totalorder %s2552_s20, %s2552_s20 }
  0x1b   :  { %3145 = vmatprep.subr.bf16.mxu0 %v3426_v3  ;;  %2804 = vmatmul.mubr.f32.vlgmr.msra.gmra.mrb[0].mxu1 %v3428_v6  ;;  %v70_v40 = vsel %vm60_vm3, %v65_v38, %v69_v39  ;;  %v78_v55 = vsel %vm77_vm8, 1.0, %v3428_v6  ;;  %v85_v2 = vstv %s2566_s28  ;;  %vm82_vm9 = vcmp.eq.s32.totalorder %v3491_v14, %v81_v1  ;;  %p3400_p5 = scmp.ne.s32.totalorder %s2552_s20, %s3399_s0  ;;  %p3405_p7 = scmp.lt.s32.totalorder %s3399_s0, %s3399_s0 }
  0x1c   :  { %3156 = vmatpush3.bf16.msra.mxu1 %v3542_v29  ;;  %2814 = vmatprep.mubr.msk.f32.mxu1 %vm3427_vm0, %v3428_v6  ;;  %vm86_vm10 = vcmp.eq.s32.totalorder %v3491_v14, %v85_v2  ;;  %v83_v9 = vsel %vm82_vm9, 1.0, %v3428_v6  ;;  %v90_v24 = vstv %s2567_s29  ;;  %v94_v25 = vstv %s2568_s30 }
  0x1d   :  { %3157 = vmatprep.subr.bf16.mxu1 %v3426_v3  ;;  %v72_v51 = vstv %s2563_s25  ;;  %v87_v10 = vsel %vm86_vm10, 1.0, %v3428_v6  ;;  %vm91_vm11 = vcmp.eq.s32.totalorder %v3491_v14, %v90_v24  ;;  %vm95_vm12 = vcmp.eq.s32.totalorder %v3491_v14, %v94_v25  ;;  %p3406_p8 = por %p3405_p7, %p3404_p6 }
  0x1e   :  { %3147 = vmatpush3.bf16.msra.mxu0 %v3509_v20  ;;  %vm73_vm7 = vcmp.eq.s32.totalorder %v3491_v14, %v72_v51  ;;  %v88_v11 = vsel %vm60_vm3, %v83_v9, %v87_v10  ;;  %v92_v30 = vsel %vm91_vm11, 1.0, %v3428_v6  ;;  %v96_v31 = vsel %vm95_vm12, 1.0, %v3428_v6 }
  0x1f   :  { %3160 = vmatprep.subr.bf16.mxu0 %v3426_v3  ;;  %v74_v54 = vsel %vm73_vm7, 1.0, %v3428_v6  ;;  %p3407_p9 = pnand %p3406_p8, %p3400_p5 }
  0x20   :  { %3159 = vmatpush3.bf16.msra.mxu1 %v3552_v32  ;;  %v79_v56 = vsel %vm60_vm3, %v74_v54, %v78_v55 }
  0x21   :  { %2793 = vmatmul.mubr.msk.f32.vlgmr.msra.gmra.mrb[0].mxu0 %vm125_vm4, %v61_v23  ;;  %3172 = vmatprep.subr.bf16.mxu1 %v3426_v3 }
  0x22   :  { %3162 = vmatpush3.bf16.msra.mxu0 %v3463_v4  ;;  %2825 = vmatprep.mubr.msk.f32.mxu0 %vm3427_vm0, %v3428_v6 }
  0x23   :  { %3163 = vmatprep.subr.bf16.mxu0 %v3426_v3 }
  0x26   :  { %3165 = vmatpush3.bf16.msra.mxu0 %v3474_v8 }
  0x27   :  { %3166 = vmatprep.subr.bf16.mxu0 %v3426_v3 }
  0xee   :  { %v339_v41 = vpop.f32.mrb[0].mxu1 }
  0xef   :  { %v2805_v42 = vpop.f32.mrb[1].mxu1 }
  0xf0   :  { %v99_v42 = vstv %s2569_s4 }
  0xf1   :  { %vm100_vm13 = vcmp.eq.s32.totalorder %v3491_v14, %v99_v42 }
  0xf4   :  { %v268_v33 = vpop.f32.mrb[0].mxu0 }
  0xf5   :  { %3355 = vtanh.f32 %v268_v33  ;;  %v2794_v34 = vpop.f32.mrb[1].mxu0  ;;  %v97_v33 = vsel %vm60_vm3, %v92_v30, %v96_v31  ;;  %v41_v30 = vld [vmem:[%s3830_s2 + $0x68] sm:$0xff] }
  0xff   :  { %v3356_v37 = vpop.eup %3355 }
 0x100   :  { %2815 = vmatmul.mubr.msk.f32.vlgmr.msra.gmra.mrb[2].mxu1 %vm125_vm4, %v3356_v37  ;;  %2826 = vmatmul.mubr.msk.f32.vlgmr.msra.gmra.mrb[2].mxu0 %vm125_vm4, %v3356_v37 }
 0x101   :  { %3168 = vmatpush3.bf16.msra.mxu0 %v3495_v15  ;;  %2836 = vmatprep.mubr.msk.f32.mxu0 %vm3427_vm0, %v3428_v6 }
 0x102   :  { %3169 = vmatprep.subr.bf16.mxu0 %v3426_v3  ;;  %3174 = vmatpush3.bf16.msra.mxu1 %v3489_v13 }
 0x103   :  { %3175 = vmatprep.subr.bf16.mxu1 %v3426_v3  ;;  %2847 = vmatprep.mubr.msk.f32.mxu1 %vm3427_vm0, %v3428_v6 }
 0x105   :  { %3171 = vmatpush3.bf16.msra.mxu0 %v3509_v20 }
 0x106   :  { %3177 = vmatpush3.bf16.msra.mxu1 %v3532_v26  ;;  %3184 = vmatprep.subr.bf16.mxu0 %v3426_v3 }
 0x107   :  { %3178 = vmatprep.subr.bf16.mxu1 %v3426_v3 }
 0x108   :  { %2837 = vmatmul.mubr.msk.f32.vlgmr.msra.gmra.mrb[2].mxu0 %vm125_vm4, %v70_v40 }
 0x109   :  { %3186 = vmatpush3.bf16.msra.mxu0 %v3463_v4  ;;  %2869 = vmatprep.mubr.msk.f32.mxu0 %vm3427_vm0, %v3428_v6 }
 0x10a   :  { %3187 = vmatprep.subr.bf16.mxu0 %v3426_v3 }
 0x10d   :  { %3189 = vmatpush3.bf16.msra.mxu0 %v3474_v8 }
 0x10e   :  { %3190 = vmatprep.subr.bf16.mxu0 %v3426_v3 }
 0x1d3   :  { %v412_v44 = vpop.f32.mrb[2].mxu1 }
 0x1d4   :  { %v413_v45 = vadd.f32 %v412_v44, %v339_v41  ;;  %v2816_v46 = vpop.f32.mrb[3].mxu1  ;;  %v103_v44 = vstv %s2570_s5 }
 0x1d5   :  { %vm104_vm14 = vcmp.eq.s32.totalorder %v3491_v14, %v103_v44  ;;  %v101_v46 = vsel %vm100_vm13, 1.0, %v3428_v6 }
 0x1d6   :  { %v420_v47 = vadd.f32 %v3588_v43, %v413_v45 }
 0x1d8   :  { %3357 = vtanh.f32 %v420_v47  ;;  %v105_v47 = vsel %vm104_vm14, 1.0, %v3428_v6 }
 0x1db   :  { %v561_v48 = vpop.f32.mrb[2].mxu0 }
 0x1dc   :  { %3359 = vtanh.f32 %v561_v48  ;;  %v2838_v49 = vpop.f32.mrb[3].mxu0  ;;  %v106_v48 = vsel %vm60_vm3, %v101_v46, %v105_v47 }
 0x1e2   :  { %v3358_v50 = vpop.eup %3357 }
 0x1e3   :  { %2848 = vmatmul.mubr.msk.f32.vlgmr.msra.gmra.mrb[4].mxu1 %vm125_vm4, %v3358_v50 }
 0x1e4   :  { %3180 = vmatpush3.bf16.msra.mxu1 %v3542_v29  ;;  %2858 = vmatprep.mubr.msk.f32.mxu1 %vm3427_vm0, %v3428_v6 }
 0x1e5   :  { %3181 = vmatprep.subr.bf16.mxu1 %v3426_v3 }
 0x1e6   :  { %v3360_v53 = vpop.eup %3359 }
 0x1e7   :  { %2870 = vmatmul.mubr.msk.f32.vlgmr.msra.gmra.mrb[4].mxu0 %vm125_vm4, %v3360_v53 }
 0x1e8   :  { %3183 = vmatpush3.bf16.msra.mxu1 %v3552_v32  ;;  %3192 = vmatpush3.bf16.msra.mxu0 %v3495_v15 }
 0x1e9   :  { %3193 = vmatprep.subr.bf16.mxu0 %v3426_v3  ;;  %2880 = vmatprep.mubr.msk.f32.mxu0 %vm3427_vm0, %v3428_v6 }
 0x1ea   :  { %3196 = vmatprep.subr.bf16.mxu1 %v3426_v3 }
 0x1eb   :  { %2859 = vmatmul.mubr.msk.f32.vlgmr.msra.gmra.mrb[6].mxu1 %vm125_vm4, %v3360_v53 }
 0x1ec   :  { %3195 = vmatpush3.bf16.msra.mxu0 %v3509_v20  ;;  %3198 = vmatpush3.bf16.msra.mxu1 %v3489_v13 }
 0x1ed   :  { %3208 = vmatprep.subr.bf16.mxu0 %v3426_v3  ;;  %3199 = vmatprep.subr.bf16.mxu1 %v3426_v3 }
 0x1ee   :  { %2891 = vmatprep.mubr.msk.f32.mxu1 %vm3427_vm0, %v3428_v6 }
 0x1ef   :  { %2881 = vmatmul.mubr.msk.f32.vlgmr.msra.gmra.mrb[4].mxu0 %vm125_vm4, %v79_v56 }
 0x1f0   :  { %3210 = vmatpush3.bf16.msra.mxu0 %v3463_v4  ;;  %3201 = vmatpush3.bf16.msra.mxu1 %v3532_v26 }
 0x1f1   :  { %3211 = vmatprep.subr.bf16.mxu0 %v3426_v3  ;;  %3202 = vmatprep.subr.bf16.mxu1 %v3426_v3 }
 0x1f2   :  { %2913 = vmatprep.mubr.msk.f32.mxu0 %vm3427_vm0, %v3428_v6 }
 0x1f4   :  { %3213 = vmatpush3.bf16.msra.mxu0 %v3474_v8 }
 0x1f5   :  { %3214 = vmatprep.subr.bf16.mxu0 %v3426_v3 }
 0x2b6   :  { %v635_v57 = vpop.f32.mrb[4].mxu1 }
 0x2b7   :  { %v2849_v58 = vpop.f32.mrb[5].mxu1 }
 0x2b8   :  { %v112_v58 = vstv %s2572_s7 }
 0x2b9   :  { %vm113_vm1 = vcmp.eq.s32.totalorder %v3491_v14, %v112_v58 }
 0x2be   :  { %v708_v59 = vpop.f32.mrb[6].mxu1 }
 0x2bf   :  { %v709_v60 = vadd.f32 %v708_v59, %v635_v57  ;;  %v2860_v61 = vpop.f32.mrb[7].mxu1  ;;  %v108_v57 = vstv %s2571_s6 }
 0x2c0   :  { %vm109_vm15 = vcmp.eq.s32.totalorder %v3491_v14, %v108_v57 }
 0x2c1   :  { %v712_v62 = vadd.f32 %v3588_v43, %v709_v60  ;;  %v110_v61 = vsel %vm109_vm15, 1.0, %v3428_v6 }
 0x2c2   :  { %v853_v63 = vpop.f32.mrb[4].mxu0 }
 0x2c3   :  { %3361 = vtanh.f32 %v712_v62  ;;  %v2882_v0 = vpop.f32.mrb[5].mxu0  ;;  %v114_v62 = vsel %vm113_vm1, 1.0, %v3428_v6 }
 0x2c4   :  { %3363 = vtanh.f32 %v853_v63  ;;  %v115_v63 = vsel %vm60_vm3, %v110_v61, %v114_v62 }
 0x2cd   :  { %v3362_v5 = vpop.eup %3361 }
 0x2ce   :  { %v3364_v7 = vpop.eup %3363  ;;  %2892 = vmatmul.mubr.msk.f32.vlgmr.msra.gmra.mrb[8].mxu1 %vm125_vm4, %v3362_v5  ;;  %v117_v5 = vstv %s2573_s8 }
 0x2cf   :  { %3204 = vmatpush3.bf16.msra.mxu1 %v3542_v29  ;;  %2914 = vmatmul.mubr.msk.f32.vlgmr.msra.gmra.mrb[6].mxu0 %vm125_vm4, %v3364_v7  ;;  %vm118_vm2 = vcmp.eq.s32.totalorder %v3491_v14, %v117_v5 }
 0x2d0   :  { %3216 = vmatpush3.bf16.msra.mxu0 %v3495_v15  ;;  %3205 = vmatprep.subr.bf16.mxu1 %v3426_v3 }
 0x2d1   :  { %3217 = vmatprep.subr.bf16.mxu0 %v3426_v3  ;;  %2902 = vmatprep.mubr.msk.f32.mxu1 %vm3427_vm0, %v3428_v6 }
 0x2d2   :  { %2924 = vmatprep.mubr.msk.f32.mxu0 %vm3427_vm0, %v3428_v6 }
 0x2d3   :  { %3207 = vmatpush3.bf16.msra.mxu1 %v3552_v32 }
 0x2d4   :  { %3219 = vmatpush3.bf16.msra.mxu0 %v3509_v20  ;;  %3220 = vmatprep.subr.bf16.mxu1 %v3426_v3 }
 0x2d5   :  { %3232 = vmatprep.subr.bf16.mxu0 %v3426_v3 }
 0x2d6   :  { %2903 = vmatmul.mubr.msk.f32.vlgmr.msra.gmra.mrb[10].mxu1 %vm125_vm4, %v3364_v7  ;;  %v121_v7 = vstv %s2574_s9 }
 0x2d7   :  { %2925 = vmatmul.mubr.msk.f32.vlgmr.msra.gmra.mrb[6].mxu0 %vm125_vm4, %v88_v11  ;;  %3222 = vmatpush3.bf16.msra.mxu1 %v3489_v13  ;;  %vm122_vm5 = vcmp.eq.s32.totalorder %v3491_v14, %v121_v7 }
 0x2d8   :  { %3234 = vmatpush3.bf16.msra.mxu0 %v3463_v4  ;;  %3223 = vmatprep.subr.bf16.mxu1 %v3426_v3 }
 0x2d9   :  { %3235 = vmatprep.subr.bf16.mxu0 %v3426_v3  ;;  %2957 = vmatprep.mubr.msk.f32.mxu0 %vm3427_vm0, %v3428_v6 }
 0x2da   :  { %2935 = vmatprep.mubr.msk.f32.mxu1 %vm3427_vm0, %v3428_v6 }
 0x2db   :  { %3225 = vmatpush3.bf16.msra.mxu1 %v3532_v26 }
 0x2dc   :  { %3237 = vmatpush3.bf16.msra.mxu0 %v3474_v8  ;;  %3226 = vmatprep.subr.bf16.mxu1 %v3426_v3 }
 0x2dd   :  { %3238 = vmatprep.subr.bf16.mxu0 %v3426_v3 }
 0x3a1   :  { %v927_v12 = vpop.f32.mrb[8].mxu1 }
 0x3a2   :  { %v2893_v16 = vpop.f32.mrb[9].mxu1 }
 0x3a9   :  { %v1000_v17 = vpop.f32.mrb[10].mxu1 }
 0x3aa   :  { %v1001_v18 = vadd.f32 %v1000_v17, %v927_v12  ;;  %v2904_v19 = vpop.f32.mrb[11].mxu1  ;;  %v1145_v21 = vpop.f32.mrb[6].mxu0  ;;  %v119_v17 = vsel %vm118_vm2, 1.0, %v3428_v6 }
 0x3ab   :  { %3365 = vtanh.f32 %v1145_v21  ;;  %v2926_v22 = vpop.f32.mrb[7].mxu0 }
 0x3ac   :  { %v1004_v23 = vadd.f32 %v3588_v43, %v1001_v18  ;;  %v123_v18 = vsel %vm122_vm5, 1.0, %v3428_v6 }
 0x3ad   :  { %v124_v14 = vsel %vm60_vm3, %v119_v17, %v123_v18 }
 0x3ae   :  { %3367 = vtanh.f32 %v1004_v23 }
 0x3b5   :  { %v3366_v27 = vpop.eup %3365 }
 0x3b6   :  { %2958 = vmatmul.mubr.msk.f32.vlgmr.msra.gmra.mrb[8].mxu0 %vm125_vm4, %v3366_v27 }
 0x3b7   :  { %3240 = vmatpush3.bf16.msra.mxu0 %v3495_v15  ;;  %2968 = vmatprep.mubr.msk.f32.mxu0 %vm3427_vm0, %v3428_v6 }
 0x3b8   :  { %v3368_v28 = vpop.eup %3367  ;;  %3241 = vmatprep.subr.bf16.mxu0 %v3426_v3 }
 0x3b9   :  { %2936 = vmatmul.mubr.msk.f32.vlgmr.msra.gmra.mrb[12].mxu1 %vm125_vm4, %v3368_v28  ;;  %v40_v28 = vld [vmem:[%s3830_s2 + $0x60] sm:$0xff] }
 0x3ba   :  { %3228 = vmatpush3.bf16.msra.mxu1 %v3542_v29  ;;  %2946 = vmatprep.mubr.msk.f32.mxu1 %vm3427_vm0, %v3428_v6 }
 0x3bb   :  { %3229 = vmatprep.subr.bf16.mxu1 %v3426_v3  ;;  %3243 = vmatpush3.bf16.msra.mxu0 %v3509_v20 }
 0x3bc   :  { %3256 = vmatprep.subr.bf16.mxu0 %v3426_v3 }
 0x3be   :  { %3231 = vmatpush3.bf16.msra.mxu1 %v3552_v32  ;;  %2969 = vmatmul.mubr.msk.f32.vlgmr.msra.gmra.mrb[8].mxu0 %vm125_vm4, %v97_v33 }
 0x3bf   :  { %3258 = vmatpush3.bf16.msra.mxu0 %v3463_v4  ;;  %3244 = vmatprep.subr.bf16.mxu1 %v3426_v3 }
 0x3c0   :  { %3259 = vmatprep.subr.bf16.mxu0 %v3426_v3  ;;  %3001 = vmatprep.mubr.msk.f32.mxu0 %vm3427_vm0, %v3428_v6 }
 0x3c1   :  { %2947 = vmatmul.mubr.msk.f32.vlgmr.msra.gmra.mrb[14].mxu1 %vm125_vm4, %v3366_v27 }
 0x3c2   :  { %3246 = vmatpush3.bf16.msra.mxu1 %v3489_v13  ;;  %2979 = vmatprep.mubr.msk.f32.mxu1 %vm3427_vm0, %v3428_v6 }
 0x3c3   :  { %3261 = vmatpush3.bf16.msra.mxu0 %v3474_v8  ;;  %3247 = vmatprep.subr.bf16.mxu1 %v3426_v3 }
 0x3c4   :  { %3262 = vmatprep.subr.bf16.mxu0 %v3426_v3 }
 0x3c6   :  { %3249 = vmatpush3.bf16.msra.mxu1 %v3532_v26 }
 0x3c7   :  { %3250 = vmatprep.subr.bf16.mxu1 %v3426_v3 }
 0x48c   :  { %v1219_v34 = vpop.f32.mrb[12].mxu1 }
 0x48d   :  { %v2937_v35 = vpop.f32.mrb[13].mxu1 }
 0x491   :  { %v1437_v36 = vpop.f32.mrb[8].mxu0 }
 0x492   :  { %3369 = vtanh.f32 %v1437_v36  ;;  %v2970_v37 = vpop.f32.mrb[9].mxu0 }
 0x494   :  { %v1292_v38 = vpop.f32.mrb[14].mxu1 }
 0x495   :  { %v1293_v39 = vadd.f32 %v1292_v38, %v1219_v34  ;;  %v2948_v40 = vpop.f32.mrb[15].mxu1 }
 0x496   :  { %v2606_v40 = vld [vmem:[%s3830_s2 + $0x81] ss:$0 sm:$0xff] }
 0x497   :  { %v1296_v41 = vadd.f32 %v3588_v43, %v1293_v39 }
 0x499   :  { %3371 = vtanh.f32 %v1296_v41 }
 0x49c   :  { %v3370_v45 = vpop.eup %3369 }
 0x49d   :  { %3002 = vmatmul.mubr.msk.f32.vlgmr.msra.gmra.mrb[10].mxu0 %vm125_vm4, %v3370_v45 }
 0x49e   :  { %3264 = vmatpush3.bf16.msra.mxu0 %v3495_v15  ;;  %3012 = vmatprep.mubr.msk.f32.mxu0 %vm3427_vm0, %v3428_v6 }
 0x49f   :  { %3265 = vmatprep.subr.bf16.mxu0 %v3426_v3 }
 0x4a2   :  { %3267 = vmatpush3.bf16.msra.mxu0 %v3509_v20 }
 0x4a3   :  { %v3372_v49 = vpop.eup %3371  ;;  %3280 = vmatprep.subr.bf16.mxu0 %v3426_v3 }
 0x4a4   :  { %2980 = vmatmul.mubr.msk.f32.vlgmr.msra.gmra.mrb[16].mxu1 %vm125_vm4, %v3372_v49 }
 0x4a5   :  { %3252 = vmatpush3.bf16.msra.mxu1 %v3542_v29  ;;  %3013 = vmatmul.mubr.msk.f32.vlgmr.msra.gmra.mrb[10].mxu0 %vm125_vm4, %v106_v48 }
 0x4a6   :  { %3253 = vmatprep.subr.bf16.mxu1 %v3426_v3  ;;  %2990 = vmatprep.mubr.msk.f32.mxu1 %vm3427_vm0, %v3428_v6 }
 0x4a7   :  { %3282 = vmatpush3.bf16.msra.mxu0 %v3463_v4  ;;  %3045 = vmatprep.mubr.msk.f32.mxu0 %vm3427_vm0, %v3428_v6 }
 0x4a8   :  { %3283 = vmatprep.subr.bf16.mxu0 %v3426_v3 }
 0x4a9   :  { %3255 = vmatpush3.bf16.msra.mxu1 %v3552_v32 }
 0x4aa   :  { %3268 = vmatprep.subr.bf16.mxu1 %v3426_v3 }
 0x4ab   :  { %3285 = vmatpush3.bf16.msra.mxu0 %v3474_v8 }
 0x4ac   :  { %2991 = vmatmul.mubr.msk.f32.vlgmr.msra.gmra.mrb[18].mxu1 %vm125_vm4, %v3370_v45  ;;  %3286 = vmatprep.subr.bf16.mxu0 %v3426_v3 }
 0x4ad   :  { %3270 = vmatpush3.bf16.msra.mxu1 %v3489_v13  ;;  %3023 = vmatprep.mubr.msk.f32.mxu1 %vm3427_vm0, %v3428_v6 }
 0x4ae   :  { %3271 = vmatprep.subr.bf16.mxu1 %v3426_v3 }
 0x4b1   :  { %3273 = vmatpush3.bf16.msra.mxu1 %v3532_v26 }
 0x4b2   :  { %3274 = vmatprep.subr.bf16.mxu1 %v3426_v3 }
 0x577   :  { %v1511_v50 = vpop.f32.mrb[16].mxu1 }
 0x578   :  { %v2981_v51 = vpop.f32.mrb[17].mxu1  ;;  %v1729_v52 = vpop.f32.mrb[10].mxu0 }
 0x579   :  { %3373 = vtanh.f32 %v1729_v52  ;;  %v3014_v53 = vpop.f32.mrb[11].mxu0 }
 0x57f   :  { %v1584_v54 = vpop.f32.mrb[18].mxu1 }
 0x580   :  { %v1585_v55 = vadd.f32 %v1584_v54, %v1511_v50  ;;  %v2992_v56 = vpop.f32.mrb[19].mxu1 }
 0x582   :  { %v1588_v59 = vadd.f32 %v3588_v43, %v1585_v55 }
 0x583   :  { %v3374_v60 = vpop.eup %3373 }
 0x584   :  { %3375 = vtanh.f32 %v1588_v59  ;;  %3046 = vmatmul.mubr.msk.f32.vlgmr.msra.gmra.mrb[12].mxu0 %vm125_vm4, %v3374_v60 }
 0x585   :  { %3288 = vmatpush3.bf16.msra.mxu0 %v3495_v15  ;;  %3056 = vmatprep.mubr.msk.f32.mxu0 %vm3427_vm0, %v3428_v6 }
 0x586   :  { %3289 = vmatprep.subr.bf16.mxu0 %v3426_v3 }
 0x589   :  { %3291 = vmatpush3.bf16.msra.mxu0 %v3509_v20 }
 0x58a   :  { %3304 = vmatprep.subr.bf16.mxu0 %v3426_v3 }
 0x58c   :  { %3057 = vmatmul.mubr.msk.f32.vlgmr.msra.gmra.mrb[12].mxu0 %vm125_vm4, %v115_v63 }
 0x58d   :  { %3306 = vmatpush3.bf16.msra.mxu0 %v3463_v4  ;;  %3089 = vmatprep.mubr.msk.f32.mxu0 %vm3427_vm0, %v3428_v6 }
 0x58e   :  { %v3376_v0 = vpop.eup %3375  ;;  %3307 = vmatprep.subr.bf16.mxu0 %v3426_v3 }
 0x58f   :  { %3024 = vmatmul.mubr.msk.f32.vlgmr.msra.gmra.mrb[20].mxu1 %vm125_vm4, %v3376_v0 }
 0x590   :  { %3276 = vmatpush3.bf16.msra.mxu1 %v3542_v29  ;;  %3034 = vmatprep.mubr.msk.f32.mxu1 %vm3427_vm0, %v3428_v6 }
 0x591   :  { %3277 = vmatprep.subr.bf16.mxu1 %v3426_v3  ;;  %3309 = vmatpush3.bf16.msra.mxu0 %v3474_v8 }
 0x592   :  { %3310 = vmatprep.subr.bf16.mxu0 %v3426_v3 }
 0x594   :  { %3279 = vmatpush3.bf16.msra.mxu1 %v3552_v32 }
 0x595   :  { %3292 = vmatprep.subr.bf16.mxu1 %v3426_v3 }
 0x597   :  { %3035 = vmatmul.mubr.msk.f32.vlgmr.msra.gmra.mrb[22].mxu1 %vm125_vm4, %v3374_v60 }
 0x598   :  { %3294 = vmatpush3.bf16.msra.mxu1 %v3489_v13  ;;  %3067 = vmatprep.mubr.msk.f32.mxu1 %vm3427_vm0, %v3428_v6 }
 0x599   :  { %3295 = vmatprep.subr.bf16.mxu1 %v3426_v3 }
 0x59c   :  { %3297 = vmatpush3.bf16.msra.mxu1 %v3532_v26 }
 0x59d   :  { %3298 = vmatprep.subr.bf16.mxu1 %v3426_v3 }
 0x65f   :  { %v2021_v4 = vpop.f32.mrb[12].mxu0 }
 0x660   :  { %3377 = vtanh.f32 %v2021_v4  ;;  %v3058_v8 = vpop.f32.mrb[13].mxu0 }
 0x662   :  { %v1803_v1 = vpop.f32.mrb[20].mxu1 }
 0x663   :  { %v3025_v2 = vpop.f32.mrb[21].mxu1 }
 0x66a   :  { %v3378_v9 = vpop.eup %3377  ;;  %v1876_v10 = vpop.f32.mrb[22].mxu1 }
 0x66b   :  { %v1877_v11 = vadd.f32 %v1876_v10, %v1803_v1  ;;  %v3036_v12 = vpop.f32.mrb[23].mxu1  ;;  %3090 = vmatmul.mubr.msk.f32.vlgmr.msra.gmra.mrb[14].mxu0 %vm125_vm4, %v3378_v9 }
 0x66c   :  { %3312 = vmatpush3.bf16.msra.mxu0 %v3495_v15  ;;  %3100 = vmatprep.mubr.msk.f32.mxu0 %vm3427_vm0, %v3428_v6 }
 0x66d   :  { %v1880_v16 = vadd.f32 %v3588_v43, %v1877_v11  ;;  %3313 = vmatprep.subr.bf16.mxu0 %v3426_v3 }
 0x66f   :  { %3379 = vtanh.f32 %v1880_v16 }
 0x670   :  { %3315 = vmatpush3.bf16.msra.mxu0 %v3509_v20 }
 0x671   :  { %3328 = vmatprep.subr.bf16.mxu0 %v3426_v3 }
 0x673   :  { %3101 = vmatmul.mubr.msk.f32.vlgmr.msra.gmra.mrb[14].mxu0 %vm125_vm4, %v124_v14 }
 0x674   :  { %3133 = vmatprep.mubr.msk.f32.mxu0 %vm3427_vm0, %v3428_v6 }
 0x679   :  { %v3380_v15 = vpop.eup %3379 }
 0x67a   :  { %3068 = vmatmul.mubr.msk.f32.vlgmr.msra.gmra.mrb[24].mxu1 %vm125_vm4, %v3380_v15 }
 0x67b   :  { %3300 = vmatpush3.bf16.msra.mxu1 %v3542_v29  ;;  %3078 = vmatprep.mubr.msk.f32.mxu1 %vm3427_vm0, %v3428_v6 }
 0x67c   :  { %3301 = vmatprep.subr.bf16.mxu1 %v3426_v3 }
 0x67f   :  { %3303 = vmatpush3.bf16.msra.mxu1 %v3552_v32 }
 0x680   :  { %3316 = vmatprep.subr.bf16.mxu1 %v3426_v3 }
 0x682   :  { %3079 = vmatmul.mubr.msk.f32.vlgmr.msra.gmra.mrb[26].mxu1 %vm125_vm4, %v3378_v9 }
 0x683   :  { %3318 = vmatpush3.bf16.msra.mxu1 %v3489_v13  ;;  %3111 = vmatprep.mubr.msk.f32.mxu1 %vm3427_vm0, %v3428_v6 }
 0x684   :  { %3319 = vmatprep.subr.bf16.mxu1 %v3426_v3 }
 0x687   :  { %3321 = vmatpush3.bf16.msra.mxu1 %v3532_v26 }
 0x688   :  { %3322 = vmatprep.subr.bf16.mxu1 %v3426_v3 }
 0x746   :  { %v2313_v20 = vpop.f32.mrb[14].mxu0 }
 0x747   :  { %v3102_v19 = vpop.f32.mrb[15].mxu0 }
 0x74d   :  { %v2095_v21 = vpop.f32.mrb[24].mxu1 }
 0x74e   :  { %v3069_v22 = vpop.f32.mrb[25].mxu1 }
 0x755   :  { %v2168_v23 = vpop.f32.mrb[26].mxu1 }
 0x756   :  { %v2169_v24 = vadd.f32 %v2168_v23, %v2095_v21  ;;  %v3080_v25 = vpop.f32.mrb[27].mxu1 }
 0x758   :  { %v2172_v27 = vadd.f32 %v3588_v43, %v2169_v24 }
 0x75a   :  { %3381 = vtanh.f32 %v2172_v27 }
 0x75b   :  { %3383 = vtanh.f32 %v2313_v20 }
 0x764   :  { %v3382_v13 = vpop.eup %3381 }
 0x765   :  { %3112 = vmatmul.mubr.msk.f32.vlgmr.msra.gmra.mrb[28].mxu1 %vm125_vm4, %v3382_v13  ;;  %v3384_v26 = vpop.eup %3383 }
 0x766   :  { %3324 = vmatpush3.bf16.msra.mxu1 %v3542_v29  ;;  %3122 = vmatprep.mubr.msk.f32.mxu1 %vm3427_vm0, %v3428_v6  ;;  %v42_v29 = vld [vmem:[%s3830_s2 + $0x70] sm:$0xff]  ;;  %v3329_v6 = vpack.c.bf16 %v41_v30, %v40_v28  ;;  %vm2543_vm0 = vcmask 58368  }
 0x767   :  { %3325 = vmatprep.subr.bf16.mxu1 %v3426_v3 }
 0x768   :  { %3330 = vmatpush3.bf16.msra.mxu0 %v3329_v6 }
 0x769   :  { %3331 = vmatprep.subr.bf16.mxu0 %v3426_v3 }
 0x76a   :  { %3327 = vmatpush3.bf16.msra.mxu1 %v3552_v32  ;;  %v43_v32 = vld [vmem:[%s3830_s2 + $0x78] sm:$0xff] }
 0x76b   :  { %v3332_v31 = vpack.c.bf16 %v43_v32, %v42_v29 }
 0x76d   :  { %3123 = vmatmul.mubr.msk.f32.vlgmr.msra.gmra.mrb[30].mxu1 %vm125_vm4, %v3384_v26  ;;  %3333 = vmatpush3.bf16.msra.mxu0 %v3332_v31 }
 0x838   :  { %v2387_v33 = vpop.f32.mrb[28].mxu1 }
 0x839   :  { %v3113_v34 = vpop.f32.mrb[29].mxu1 }
 0x840   :  { %v2460_v35 = vpop.f32.mrb[30].mxu1 }
 0x841   :  { %v2461_v36 = vadd.f32 %v2460_v35, %v2387_v33  ;;  %v3124_v37 = vpop.f32.mrb[31].mxu1 }
 0x843   :  { %v2464_v38 = vadd.f32 %v3588_v43, %v2461_v36 }
 0x845   :  { %3385 = vtanh.f32 %v2464_v38 }
 0x84f   :  { %v3386_v39 = vpop.eup %3385 }
 0x850   :  { %3134 = vmatmul.mubr.msk.f32.vlgmr.msra.gmra.mrb[16].mxu0 %vm125_vm4, %v3386_v39 }
 0x923   :  { %v2539_v41 = vpop.f32.mrb[16].mxu0 }
 0x924   :  { %v2540_v3 = vadd.f32 %v2606_v40, %v2539_v41  ;;  %v3135_v42 = vpop.f32.mrb[17].mxu0 }
 0x926   :  { %2544 = vst.msk [vmem:[#allocation5] sm:$0x3] %vm2543_vm0, %v2540_v3 }
 0x927   :  { %3410 = shalt.err (!%p3407_p9)
}
 0x928   :  { %s3411_s23 = scalar_lea.hbm %s3831_s3, 32 }
 0x929   :  { %p3412_p10 = scmp.ne.s32.totalorder %s3831_s3, %s3411_s23  ;;  %p3415_p11 = scmp.lt.u32.totalorder %s3411_s23, %s3831_s3 }
 0x92b   :  { %p3417_p12 = pnand %p3415_p11, %p3412_p10 }
 0x92d   :  { %3420 = shalt.err (!%p3417_p12)
}
 0x92e   :  { %2554 = dma.vmem_to_hbm [thread:$0]  %s2552_s20, 32, %s3831_s3, [#allocation3]  }
 0x92f   :  { %3423 = dma.done.wait [#allocation3], 32  }
 0x930   :  { %3424 = vsyncadd [#allocation3], 4294967264 }
 0x931   :  { %2558 = vsyncpa [#allocation3], 1 }
 0x932   :  { %2559 = vsyncpa [#allocation4], 1 }

</bundles_post_ra>
